<compile_context>
chip_gen: v7x
topology: tpu7x:2x2x1
jax: 0.10.0
libtpu: 0.0.40
codegen_flags: <defaults>
</compile_context>

<pallas_src>
import jax
import jax.numpy as jnp
from jax.experimental import pallas as pl
from jax.experimental.pallas import tpu as pltpu


_LANES = 128           # flatten to (rows, 128); pad only to 128, never 1024
_N_DMA_CHUNKS = 4      # concurrent DMAs for large copies
_MIN_CHUNK_BYTES = 1 << 20   # only split when each chunk moves >= 1 MiB


def _make_head_copy_kernel(n_chunks: int, chunk_rows: int):
    """Identity copy: HBM -> HBM DMA, no VMEM staging, no vld/vst.

    n_chunks DMAs are started back-to-back (each with its own semaphore) and
    then all are waited on, so they are concurrently in flight.
    """

    def kernel(x_hbm, o_hbm, sem):
        copies = []
        for c in range(n_chunks):
            if n_chunks == 1:
                src, dst = x_hbm, o_hbm
            else:
                r0 = c * chunk_rows           # static, chunk_rows-aligned
                src = x_hbm.at[pl.ds(r0, chunk_rows)]
                dst = o_hbm.at[pl.ds(r0, chunk_rows)]
            cp = pltpu.make_async_copy(src, dst, sem.at[c])
            cp.start()
            copies.append(cp)
        for cp in copies:
            cp.wait()

    return kernel


def head_forward(x: jax.Array) -> dict:
    """Pallas equivalent of Head.forward (abstract stub -> identity head).

    Args:
      x: input tensor, NCHW layout, any dtype.
    Returns:
      Dict[str, jax.Array] matching the declared return type of Head.forward.
    """
    orig_shape = x.shape
    total = x.size

    # DMA view: (rows, 128).  Common case (total % 128 == 0) is a free
    # flattening reshape -- no pad, no trailing slice.  Ragged sizes pad to
    # the next multiple of 128 only (<= 127 elements of waste).
    pad = (-total) % _LANES
    if pad == 0:
        view = x.reshape(total // _LANES, _LANES)
    else:
        view = jnp.pad(x.reshape(-1), (0, pad)).reshape(
            (total + pad) // _LANES, _LANES)
    rows = view.shape[0]

    # Split large copies into a few concurrent DMAs; tiny inputs -> one DMA.
    nbytes = rows * _LANES * x.dtype.itemsize
    if rows % _N_DMA_CHUNKS == 0 and nbytes >= _N_DMA_CHUNKS * _MIN_CHUNK_BYTES:
        n_chunks = _N_DMA_CHUNKS
    else:
        n_chunks = 1
    chunk_rows = rows // n_chunks

    out2d = pl.pallas_call(
        _make_head_copy_kernel(n_chunks, chunk_rows),
        out_shape=jax.ShapeDtypeStruct(view.shape, view.dtype),
        in_specs=[pl.BlockSpec(memory_space=pl.ANY)],    # raw HBM ref, no auto-DMA
        out_specs=pl.BlockSpec(memory_space=pl.ANY),     # raw HBM ref, written via DMA
        scratch_shapes=[pltpu.SemaphoreType.DMA((n_chunks,))],
    )(view)

    if pad == 0:
        out = out2d.reshape(orig_shape)
    else:
        out = out2d.reshape(-1)[:total].reshape(orig_shape)
    return {"out": out}


if __name__ == "__main__":
    key = jax.random.PRNGKey(0)

    # Small NCHW input consistent with a detection/segmentation head input.
    x = jax.random.normal(key, (2, 4, 16, 16), dtype=jnp.float32)
    y = jax.block_until_ready(head_forward(x)["out"])
    assert y.shape == x.shape and y.dtype == x.dtype
    assert bool(jnp.all(y == x))

    # Odd channel count (still a multiple of 128 elements -> no padding path).
    x2 = jax.random.normal(key, (2, 3, 16, 16), dtype=jnp.float32)
    y2 = jax.block_until_ready(head_forward(x2)["out"])
    assert y2.shape == x2.shape and bool(jnp.all(y2 == x2))

    # Large input: exercises the multi-DMA (4 concurrent chunks) path.
    x_big = jax.random.normal(key, (4, 64, 64, 64), dtype=jnp.float32)
    y_big = jax.block_until_ready(head_forward(x_big)["out"])
    assert y_big.shape == x_big.shape and bool(jnp.all(y_big == x_big))

    # Ragged size (not a multiple of 128): pad-to-128 fallback path.
    x_rag = jax.random.normal(key, (2, 3, 5, 7), dtype=jnp.float32)
    y_rag = jax.block_until_ready(head_forward(x_rag)["out"])
    assert y_rag.shape == x_rag.shape and bool(jnp.all(y_rag == x_rag))

    # Non-f32 dtype passthrough.
    x_bf = jax.random.normal(key, (2, 4, 16, 16), dtype=jnp.bfloat16)
    y_bf = jax.block_until_ready(head_forward(x_bf)["out"])
    assert y_bf.dtype == jnp.bfloat16 and bool(jnp.all(y_bf == x_bf))

    print("KERNEL_OK")
</pallas_src>

<mosaic_0001>
module attributes {stable_mosaic.version = 11 : i64} {
  func.func @kernel(%arg0: memref<16x128xf32, #tpu.memory_space<any>>, %arg1: memref<16x128xf32, #tpu.memory_space<any>>, %arg2: memref<1x!tpu.dma_semaphore, #tpu.memory_space<semaphore_mem>>) attributes {dimension_semantics = [], scalar_prefetch = 0 : i64, scratch_operands = 1 : i64, tpu.core_type = #tpu.core_type<tc>} {
    %c0_i32 = arith.constant 0 : i32
    %0 = tpu.memref_slice %arg2[%c0_i32] : memref<1x!tpu.dma_semaphore, #tpu.memory_space<semaphore_mem>> -> memref<1x!tpu.dma_semaphore, #tpu.memory_space<semaphore_mem>>
    %1 = tpu.memref_squeeze %0 : memref<1x!tpu.dma_semaphore, #tpu.memory_space<semaphore_mem>> -> memref<!tpu.dma_semaphore, #tpu.memory_space<semaphore_mem>>
    tpu.enqueue_dma source(%arg0 : memref<16x128xf32, #tpu.memory_space<any>>) target(%arg1 : memref<16x128xf32, #tpu.memory_space<any>>) target_semaphore(%1 : memref<!tpu.dma_semaphore, #tpu.memory_space<semaphore_mem>>)
    %c0_i32_0 = arith.constant 0 : i32
    %2 = tpu.memref_slice %arg2[%c0_i32_0] : memref<1x!tpu.dma_semaphore, #tpu.memory_space<semaphore_mem>> -> memref<1x!tpu.dma_semaphore, #tpu.memory_space<semaphore_mem>>
    %3 = tpu.memref_squeeze %2 : memref<1x!tpu.dma_semaphore, #tpu.memory_space<semaphore_mem>> -> memref<!tpu.dma_semaphore, #tpu.memory_space<semaphore_mem>>
    tpu.wait_dma2 semaphore(%3 : memref<!tpu.dma_semaphore, #tpu.memory_space<semaphore_mem>>) src(%arg0 : memref<16x128xf32, #tpu.memory_space<any>>) dst(%arg1 : memref<16x128xf32, #tpu.memory_space<any>>)
    return
  }
}

</mosaic_0001>

<bundles_post_ra>
// kernel: tpu_custom_call.1
= control target key start
LH: loop header
LB: loop body
LE: loop exit
PB: predicated region body
PF: predicated region fallthrough
CT: control target
= control target key end

     0   :  { %s34_s6 = smov [#allocation2]   ;;  %s35_s7 = smov [#allocation3]   ;;  %s53_s0 = inlined_call_operand.hbm [shape: f32[16,128], index: 0, kind: input, shape index: {}]   ;;  %s54_s1 = inlined_call_operand.hbm [shape: f32[16,128], index: 1, kind: output, shape index: {}]  }
   0x1   :  { %s36_s8 = smov 0  }
   0x2   :  { %18 = dma.general %s53_s0, 256, %s54_s1, %s34_s6, %s35_s7, [#allocation4], %s36_s8, 0  }
   0x3   :  { %32 = dma.done.wait [#allocation2], 256 }
   0x4   :  { %33 = vsyncadd [#allocation2], 4294967040 }
   0x5   :  { %22 = vsyncmov [#allocation2] }
   0x8   :  { %s23_s13 = vpop.sfrf %22 }
   0x9   :  { %p28_p0 = scmp.ne.s32.totalorder %s23_s13, 0 }
   0xb   :  { %27 = shalt.err (%p28_p0)  }

</bundles_post_ra>
